<compile_context>
chip_gen: v5e
topology: v5e:2x2
jax: 0.10.0
libtpu: 0.0.40
codegen_flags: <defaults>
</compile_context>

<pallas_src>
import functools

import jax
import jax.numpy as jnp
from jax.experimental import pallas as pl
from jax.experimental.pallas import tpu as pltpu


# Fixed (non-learnable) binomial kernel, identical to the nn.Parameter in __init__.
_KERNEL = (
    (1.0, 2.0, 1.0),
    (2.0, 4.0, 2.0),
    (1.0, 2.0, 1.0),
)
_KERNEL_SUM = 16.0


def _smooth_plane_kernel(x_ref, o_ref):
    """Block = (P, H, W): P independent planes; used when W >= 128 (lane-dense)."""
    x = x_ref[...].astype(jnp.float32)
    _, h, w = x.shape

    # Vertical [1, 2, 1] along H (sublane shifts) with replication at borders.
    up = jnp.concatenate([x[:, :1, :], x[:, : h - 1, :]], axis=1)    # row i-1 (repl. at i=0)
    down = jnp.concatenate([x[:, 1:, :], x[:, h - 1:, :]], axis=1)   # row i+1 (repl. at i=H-1)
    v = up + (x + x) + down

    # Horizontal [1, 2, 1] along W (lane shifts) with replication at borders.
    left = jnp.concatenate([v[:, :, :1], v[:, :, : w - 1]], axis=2)
    right = jnp.concatenate([v[:, :, 1:], v[:, :, w - 1:]], axis=2)
    o_ref[...] = ((left + (v + v) + right) * (1.0 / _KERNEL_SUM)).astype(o_ref.dtype)


def _smooth_flat_kernel(x_ref, o_ref, *, w):
    """Block = (P, H*W): one whole flattened plane per sublane row; used when W < 128.

    Keeps the lane axis dense (H*W lanes) so loads/stores avoid masked partial
    vst's at small spatial sizes.
    """
    x = x_ref[...].astype(jnp.float32)
    p, hw = x.shape

    # Vertical [1, 2, 1]: same-column neighbors live W lanes away.  The edge
    # slices implement replication of the first/last row for free.
    up = jnp.concatenate([x[:, :w], x[:, : hw - w]], axis=1)
    down = jnp.concatenate([x[:, w:], x[:, hw - w:]], axis=1)
    v = up + (x + x) + down

    # Horizontal [1, 2, 1]: shift by one lane; fix the row-boundary wraparound
    # (replication at columns 0 and W-1) with a column-index mask.
    col = jax.lax.broadcasted_iota(jnp.int32, (p, hw), 1) % w
    left = jnp.concatenate([v[:, :1], v[:, : hw - 1]], axis=1)
    left = jnp.where(col == 0, v, left)
    right = jnp.concatenate([v[:, 1:], v[:, hw - 1:]], axis=1)
    right = jnp.where(col == w - 1, v, right)

    o_ref[...] = ((left + (v + v) + right) * (1.0 / _KERNEL_SUM)).astype(o_ref.dtype)


def _vmem_capacity_bytes() -> int:
    """Physical VMEM of the current chip; conservative fallback if unqueryable."""
    try:
        return int(pltpu.get_tpu_info().vmem_capacity_bytes)
    except Exception:
        return 64 * 1024 * 1024  # v7x per-TensorCore VMEM (most restrictive)


def _chunk_planes(bc: int, plane_f32_bytes: int, vmem_limit_bytes: int,
                  *, multiple_of_8: bool) -> int:
    """How many planes to process per grid step.

    Rough budget: 2x in + 2x out pipeline buffers plus ~8 live f32 temporaries
    inside the kernel -> ~24 plane-sized slabs of VMEM per processed plane.
    """
    budget = max(plane_f32_bytes, vmem_limit_bytes // 24)
    p = max(1, budget // plane_f32_bytes)
    if bc >= 16:
        # Keep >= 2 grid steps so v7x's two TensorCores both get work on the
        # "parallel" plane-chunk axis.
        p = min(p, pl.cdiv(bc, 2))
    if p >= bc:
        return int(bc)
    if multiple_of_8:
        # Second-to-last block dim must be a multiple of 8 (or the full dim).
        p = max(8, (p // 8) * 8)
    return int(min(p, bc))


def smooth(x: jax.Array) -> jax.Array:
    """Pallas implementation of Smooth.forward. x: (B, C, H, W) -> (B, C, H, W)."""
    b, c, h, w = x.shape
    bc = b * c
    vmem_cap = _vmem_capacity_bytes()
    vmem_limit = (3 * vmem_cap) // 4          # 96 MiB on v5e/v6e, 48 MiB on v7x

    if w >= 128:
        # NCHW is already lane-dense: tile over chunks of whole (H, W) planes.
        xf = x.reshape(bc, h, w)
        p = _chunk_planes(bc, h * w * 4, vmem_limit, multiple_of_8=False)
        out = pl.pallas_call(
            _smooth_plane_kernel,
            out_shape=jax.ShapeDtypeStruct((bc, h, w), x.dtype),
            grid=(pl.cdiv(bc, p),),
            in_specs=[pl.BlockSpec((p, h, w), lambda i: (i, 0, 0))],
            out_specs=pl.BlockSpec((p, h, w), lambda i: (i, 0, 0)),
            compiler_params=pltpu.CompilerParams(
                dimension_semantics=("parallel",),
                vmem_limit_bytes=int(vmem_limit),
            ),
        )(xf)
        return out.reshape(b, c, h, w)

    # Small-W path: flatten each plane into the lane axis (free, contiguous
    # reshape) so loads/stores and VPU work are lane-dense.
    hw = h * w
    xf = x.reshape(bc, hw)
    p = _chunk_planes(bc, hw * 4, vmem_limit, multiple_of_8=True)
    out = pl.pallas_call(
        functools.partial(_smooth_flat_kernel, w=w),
        out_shape=jax.ShapeDtypeStruct((bc, hw), x.dtype),
        grid=(pl.cdiv(bc, p),),
        in_specs=[pl.BlockSpec((p, hw), lambda i: (i, 0))],
        out_specs=pl.BlockSpec((p, hw), lambda i: (i, 0)),
        compiler_params=pltpu.CompilerParams(
            dimension_semantics=("parallel",),
            vmem_limit_bytes=int(vmem_limit),
        ),
    )(xf)
    return out.reshape(b, c, h, w)


def _smooth_reference(x: jax.Array) -> jax.Array:
    """Pure-JAX reference: replication pad + 3x3 depthwise conv."""
    b, c, h, w = x.shape
    xf = x.reshape(b * c, h, w).astype(jnp.float32)
    xp = jnp.pad(xf, ((0, 0), (1, 1), (1, 1)), mode="edge")
    acc = jnp.zeros_like(xf)
    for di in range(3):
        for dj in range(3):
            acc = acc + (_KERNEL[di][dj] / _KERNEL_SUM) * xp[:, di:di + h, dj:dj + w]
    return acc.reshape(b, c, h, w).astype(x.dtype)


if __name__ == "__main__":
    key = jax.random.PRNGKey(0)

    # Main test (small-W lane-dense flattened path): (2, 4, 16, 16).
    x = jax.random.normal(key, (2, 4, 16, 16), dtype=jnp.float32)
    y = smooth(x)
    jax.block_until_ready(y)
    assert y.shape == x.shape and y.dtype == x.dtype
    assert jnp.allclose(y, _smooth_reference(x), atol=1e-5, rtol=1e-5)

    # Plane count not divisible by the 8-row chunk (partial last block on the
    # flattened-plane grid axis).
    x2 = jax.random.normal(jax.random.PRNGKey(1), (1, 20, 16, 16), dtype=jnp.float32)
    y2 = smooth(x2)
    jax.block_until_ready(y2)
    assert jnp.allclose(y2, _smooth_reference(x2), atol=1e-5, rtol=1e-5)

    # Wide-W path (W >= 128) exercising the 3-D plane-chunk kernel.
    x3 = jax.random.normal(jax.random.PRNGKey(2), (1, 2, 16, 128), dtype=jnp.float32)
    y3 = smooth(x3)
    jax.block_until_ready(y3)
    assert jnp.allclose(y3, _smooth_reference(x3), atol=1e-5, rtol=1e-5)

    print("KERNEL_OK")
</pallas_src>

<mosaic_0001>
module attributes {stable_mosaic.version = 11 : i64} {
  func.func @_smooth_flat_kernel(%arg0: i32, %arg1: memref<8x256xf32, #tpu.memory_space<vmem>>, %arg2: memref<8x256xf32, #tpu.memory_space<vmem>>) attributes {dimension_semantics = [#tpu.dimension_semantics<parallel>], iteration_bounds = array<i64: 1>, scalar_prefetch = 0 : i64, scratch_operands = 0 : i64, tpu.core_type = #tpu.core_type<tc>, window_params = [{transform_indices = @transform_0, window_bounds = array<i64: 8, 256>}, {transform_indices = @transform_1, window_bounds = array<i64: 8, 256>}]} {
    %c0 = arith.constant 0 : index
    %c0_0 = arith.constant 0 : index
    %0 = vector.load %arg1[%c0, %c0_0] : memref<8x256xf32, #tpu.memory_space<vmem>>, vector<8x256xf32>
    %1 = vector.extract_strided_slice %0 {offsets = [0, 0], sizes = [8, 16], strides = [1, 1]} : vector<8x256xf32> to vector<8x16xf32>
    %2 = vector.extract_strided_slice %0 {offsets = [0, 0], sizes = [8, 240], strides = [1, 1]} : vector<8x256xf32> to vector<8x240xf32>
    %3 = tpu.concatenate %1, %2 in 1 : vector<8x16xf32>, vector<8x240xf32> -> vector<8x256xf32>
    %4 = vector.extract_strided_slice %0 {offsets = [0, 16], sizes = [8, 240], strides = [1, 1]} : vector<8x256xf32> to vector<8x240xf32>
    %5 = vector.extract_strided_slice %0 {offsets = [0, 240], sizes = [8, 16], strides = [1, 1]} : vector<8x256xf32> to vector<8x16xf32>
    %6 = tpu.concatenate %4, %5 in 1 : vector<8x240xf32>, vector<8x16xf32> -> vector<8x256xf32>
    %7 = arith.addf %0, %0 : vector<8x256xf32>
    %8 = arith.addf %3, %7 : vector<8x256xf32>
    %9 = arith.addf %8, %6 : vector<8x256xf32>
    %10 = tpu.iota {dimensions = array<i32: 1>} : vector<8x256xi32>
    %c16_i32 = arith.constant 16 : i32
    %c0_i32 = arith.constant 0 : i32
    %11 = arith.cmpi eq, %c16_i32, %c0_i32 : i32
    %c1_i32 = arith.constant 1 : i32
    %12 = arith.select %11, %c1_i32, %c16_i32 : i32
    %13 = vector.broadcast %12 : i32 to vector<8x256xi32>
    %14 = arith.remsi %10, %13 : vector<8x256xi32>
    %c0_i32_1 = arith.constant 0 : i32
    %15 = vector.broadcast %c0_i32_1 : i32 to vector<8x256xi32>
    %16 = arith.cmpi ne, %14, %15 : vector<8x256xi32>
    %c0_i32_2 = arith.constant 0 : i32
    %17 = vector.broadcast %c0_i32_2 : i32 to vector<8x256xi32>
    %18 = arith.cmpi slt, %14, %17 : vector<8x256xi32>
    %c0_i32_3 = arith.constant 0 : i32
    %19 = arith.cmpi slt, %12, %c0_i32_3 : i32
    %20 = vector.broadcast %19 : i1 to vector<8x256xi1>
    %21 = vector.broadcast %20 : vector<8x256xi1> to vector<8x256xi1>
    %22 = arith.xori %18, %21 : vector<8x256xi1>
    %23 = arith.andi %22, %16 : vector<8x256xi1>
    %24 = vector.broadcast %12 : i32 to vector<8x256xi32>
    %25 = arith.addi %14, %24 : vector<8x256xi32>
    %26 = arith.select %23, %25, %14 : vector<8x256xi1>, vector<8x256xi32>
    %27 = vector.extract_strided_slice %9 {offsets = [0, 0], sizes = [8, 1], strides = [1, 1]} : vector<8x256xf32> to vector<8x1xf32>
    %28 = vector.extract_strided_slice %9 {offsets = [0, 0], sizes = [8, 255], strides = [1, 1]} : vector<8x256xf32> to vector<8x255xf32>
    %29 = tpu.concatenate %27, %28 in 1 : vector<8x1xf32>, vector<8x255xf32> -> vector<8x256xf32>
    %c0_i32_4 = arith.constant 0 : i32
    %30 = vector.broadcast %c0_i32_4 : i32 to vector<8x256xi32>
    %31 = arith.cmpi eq, %26, %30 : vector<8x256xi32>
    %32 = arith.select %31, %9, %29 : vector<8x256xi1>, vector<8x256xf32>
    %33 = vector.extract_strided_slice %9 {offsets = [0, 1], sizes = [8, 255], strides = [1, 1]} : vector<8x256xf32> to vector<8x255xf32>
    %34 = vector.extract_strided_slice %9 {offsets = [0, 255], sizes = [8, 1], strides = [1, 1]} : vector<8x256xf32> to vector<8x1xf32>
    %35 = tpu.concatenate %33, %34 in 1 : vector<8x255xf32>, vector<8x1xf32> -> vector<8x256xf32>
    %c15_i32 = arith.constant 15 : i32
    %36 = vector.broadcast %c15_i32 : i32 to vector<8x256xi32>
    %37 = arith.cmpi eq, %26, %36 : vector<8x256xi32>
    %38 = arith.select %37, %9, %35 : vector<8x256xi1>, vector<8x256xf32>
    %39 = arith.addf %9, %9 : vector<8x256xf32>
    %40 = arith.addf %32, %39 : vector<8x256xf32>
    %41 = arith.addf %40, %38 : vector<8x256xf32>
    %cst = arith.constant 6.250000e-02 : f32
    %42 = vector.broadcast %cst : f32 to vector<8x256xf32>
    %43 = arith.mulf %41, %42 : vector<8x256xf32>
    %c0_5 = arith.constant 0 : index
    %c0_6 = arith.constant 0 : index
    %44 = vector.load %arg2[%c0_5, %c0_6] : memref<8x256xf32, #tpu.memory_space<vmem>>, vector<8x256xf32>
    tpu.vector_store %arg2[%c0_5, %c0_6], %43 {strides = array<i32>} : memref<8x256xf32, #tpu.memory_space<vmem>>, vector<8x256xf32>,
    return
  }
  func.func @transform_0(%arg0: i32) -> (i32, i32) {
    %c0_i32 = arith.constant 0 : i32
    %c0_i32_0 = arith.constant 0 : i32
    return %arg0, %c0_i32 : i32, i32
  }
  func.func @transform_1(%arg0: i32) -> (i32, i32) {
    %c0_i32 = arith.constant 0 : i32
    %c0_i32_0 = arith.constant 0 : i32
    return %arg0, %c0_i32 : i32, i32
  }
}

</mosaic_0001>

<bundles_post_ra>
// kernel: tpu_custom_call.1
= control target key start
LH: loop header
LB: loop body
LE: loop exit
PB: predicated region body
PF: predicated region fallthrough
CT: control target
= control target key end

     0   :  { %6 = vsyncpa [#allocation3], 0  ;;  %s213_s0 = inlined_call_operand.hbm [shape: f32[8,256], index: 0, kind: input, shape index: {}]   ;;  %s214_s1 = inlined_call_operand.hbm [shape: f32[8,256], index: 1, kind: output, shape index: {}]  }
   0x1   :  { %7 = vsyncpa [#allocation4], 0  ;;  %s13_s8 = sshll.u32 %s213_s0, 4  ;;  %s191_s9 = smov [#allocation2]   ;;  %s14_s8 = int_to_ptr.hbm [resolvable:$true] %s13_s8 }
   0x2   :  { %s15_s10 = sshll.u32 %s191_s9, 4  ;;  %s16_s10 = int_to_ptr.vmem [resolvable:$true] %s15_s10 }
   0x3   :  { %18 = dma.hbm_to_vmem [thread:$0]  %s14_s8, 256, %s16_s10, [#allocation3]  }
   0x4   :  { %187 = dma.done.wait [#allocation3], 256  }
   0x5   :  { %188 = vsyncadd [#allocation3], 4294967040  ;;  %v23_v0 = vld [vmem:[#allocation2] sm:$0xff]  ;;  %s192_s11 = smov 112   ;;  %s193_s12 = smov 16   ;;  %v24_v1 = vld [vmem:[#allocation2 + $0x8] sm:$0xff]  ;;  %v51_v16 = vlaneseq }
   0x6   :  { %36 = vrot.lane.b32.xlu1 %v23_v0, %s192_s11  ;;  %27 = vrot.lane.b32.xlu0 %v23_v0, %s193_s12  ;;  %vm31_vm0 = vcmask 130048   ;;  %v45_v4 = vadd.f32 %v23_v0, %v23_v0  ;;  %vm40_vm1 = vcmask 916480   ;;  %v46_v6 = vadd.f32 %v24_v1, %v24_v1  ;;  %s194_s0 = smov 127   ;;  %s195_s13 = smov 1  }
   0x7   :  { %v52_v18 = vand.u32 127, %v51_v16  ;;  %vm84_vm2 = vcmask 7168   ;;  %vm97_vm5 = vcmask 1039360   ;;  %s196_s14 = smov [#allocation5]   ;;  %s123_s18 = sshll.u32 %s214_s1, 4  ;;  %s124_s18 = int_to_ptr.hbm [resolvable:$true] %s123_s18 }
   0x8   :  { %s121_s15 = sshll.u32 %s196_s14, 4  ;;  %s122_s15 = int_to_ptr.vmem [resolvable:$true] %s121_s15 }
   0x9   :  { %v53_v19 = vadd.s32 128, %v52_v18  ;;  %v58_v20 = vand.u32 15, %v52_v18 }
   0xb   :  { %v65_v21 = vand.u32 15, %v53_v19  ;;  %vm89_vm3 = vcmp.eq.s32.totalorder %v58_v20, 0  ;;  %vm102_vm6 = vcmp.eq.s32.totalorder %v58_v20, 15 }
   0xd   :  { %vm90_vm4 = vcmp.eq.s32.totalorder %v65_v21, 0  ;;  %vm103_vm7 = vcmp.eq.s32.totalorder %v65_v21, 15 }
   0xe   :  { %38 = vrot.lane.b32.xlu1 %v24_v1, %s192_s11  ;;  %29 = vrot.lane.b32.xlu0 %v24_v1, %s193_s12 }
  0x78   :  { %v37_v2 = vpop.permute.xlu1 %36  ;;  %v28_v3 = vpop.permute.xlu0 %27 }
  0x79   :  { %v35_v5 = vsel %vm31_vm0, %v23_v0, %v28_v3 }
  0x7a   :  { %v47_v7 = vadd.f32 %v45_v4, %v35_v5 }
  0x80   :  { %v39_v8 = vpop.permute.xlu1 %38  ;;  %v30_v9 = vpop.permute.xlu0 %29 }
  0x81   :  { %v41_v10 = vsel %vm40_vm1, %v37_v2, %v39_v8  ;;  %v44_v11 = vsel %vm40_vm1, %v39_v8, %v24_v1  ;;  %v32_v12 = vsel %vm31_vm0, %v28_v3, %v30_v9 }
  0x82   :  { %v49_v13 = vadd.f32 %v47_v7, %v41_v10  ;;  %v48_v14 = vadd.f32 %v46_v6, %v32_v12 }
  0x84   :  { %v50_v15 = vadd.f32 %v48_v14, %v44_v11  ;;  %93 = vrot.lane.b32.xlu0 %v49_v13, %s194_s0  ;;  %80 = vrot.lane.b32.xlu2 %v49_v13, %s195_s13  ;;  %v106_v27 = vadd.f32 %v49_v13, %v49_v13 }
  0x86   :  { %95 = vrot.lane.b32.xlu1 %v50_v15, %s194_s0  ;;  %v107_v28 = vadd.f32 %v50_v15, %v50_v15 }
  0x8c   :  { %82 = vrot.lane.b32.xlu2 %v50_v15, %s195_s13 }
  0xde   :  { %v81_v17 = vpop.permute.xlu2 %80 }
  0xdf   :  { %v88_v23 = vsel %vm84_vm2, %v49_v13, %v81_v17 }
  0xe0   :  { %v91_v25 = vsel %vm89_vm3, %v49_v13, %v88_v23 }
  0xe1   :  { %v108_v31 = vadd.f32 %v106_v27, %v91_v25 }
  0xe6   :  { %v83_v22 = vpop.permute.xlu2 %82 }
  0xe7   :  { %v85_v24 = vsel %vm84_vm2, %v81_v17, %v83_v22 }
  0xe8   :  { %v92_v26 = vsel %vm90_vm4, %v50_v15, %v85_v24 }
  0xe9   :  { %v109_v32 = vadd.f32 %v107_v28, %v92_v26 }
  0xf6   :  { %v94_v29 = vpop.permute.xlu0 %93 }
  0xf8   :  { %v96_v30 = vpop.permute.xlu1 %95 }
  0xf9   :  { %v98_v33 = vsel %vm97_vm5, %v94_v29, %v96_v30  ;;  %v101_v34 = vsel %vm97_vm5, %v96_v30, %v50_v15 }
  0xfa   :  { %v104_v35 = vsel %vm102_vm6, %v49_v13, %v98_v33  ;;  %v105_v36 = vsel %vm103_vm7, %v50_v15, %v101_v34 }
  0xfb   :  { %v110_v37 = vadd.f32 %v108_v31, %v104_v35  ;;  %v111_v38 = vadd.f32 %v109_v32, %v105_v36 }
  0xfd   :  { %v112_v39 = vmul.f32 0.0625, %v110_v37  ;;  %v113_v40 = vmul.f32 0.0625, %v111_v38 }
  0xff   :  { %114 = vst [vmem:[#allocation5] sm:$0xff] %v112_v39 }
 0x100   :  { %115 = vst [vmem:[#allocation5 + $0x8] sm:$0xff] %v113_v40 }
 0x101   :  { %126 = dma.vmem_to_hbm [thread:$0]  %s122_s15, 256, %s124_s18, [#allocation4]  }
 0x102   :  { %189 = dma.done.wait [#allocation4], 256  }
 0x103   :  { %190 = vsyncadd [#allocation4], 4294967040 }
 0x104   :  { %131 = vsyncpa [#allocation3], 1 }
 0x105   :  { %132 = vsyncpa [#allocation4], 1 }

</bundles_post_ra>
